<compile_context>
chip_gen: v7x
topology: tpu7x:2x2x1
jax: 0.10.0
libtpu: 0.0.40
codegen_flags: <defaults>
</compile_context>

<pallas_src>
import jax
import jax.numpy as jnp
from jax.experimental import pallas as pl
from jax.experimental.pallas import tpu as pltpu

KH = KW = 3  # conv kernel size


def _relu_conv3x3_kernel(w_ref, x_ref, o_ref, xp_ref):
    # w_ref : SMEM (3, 3) f32                     -- conv weights (C_out=C_in=1 squeezed)
    # x_ref : VMEM (Nb, 1, H, W) f32              -- input block (Nb batch images)
    # o_ref : VMEM (Nb, 1, H, W) f32              -- conv output block
    # xp_ref: VMEM (Nb, 1, H+2, W+2) f32 scratch  -- zero-padded, ReLU'd input (in-kernel halo)
    H = o_ref.shape[2]
    W = o_ref.shape[3]

    # In-kernel padding: zero the scratch (halo stays 0), write ReLU'd interior.
    xp_ref[...] = jnp.zeros_like(xp_ref)
    xp_ref[:, :, 1:H + 1, 1:W + 1] = jnp.maximum(x_ref[...], 0.0)

    acc = jnp.zeros(o_ref.shape, jnp.float32)
    for kw in range(KW):
        # One lane-axis (W) shifted load per column tap ...
        xw = xp_ref[:, :, :, kw:kw + W]            # (Nb, 1, H+2, W)
        # ... reused by the three row taps, which are cheap sublane slices.
        for kh in range(KH):
            acc = acc + w_ref[kh, kw] * xw[:, :, kh:kh + H, :]
    o_ref[...] = acc


def relu_conv3x3(x, weight):
    """x: (N, 1, H, W) float32, weight: (1, 1, 3, 3) float32 -> (N, 1, H, W)."""
    N, C, H, W = x.shape
    assert C == 1 and weight.shape == (1, 1, KH, KW)

    x = x.astype(jnp.float32)
    w2d = weight.reshape(KH, KW).astype(jnp.float32)

    # Fold as many batch images as possible into one block (a few MiB max) so
    # per-grid-step overhead is amortized; keep Nb a divisor of N so every
    # block is full.  For the toy (2,1,4,4) input this gives Nb=N, grid=(1,).
    bytes_per_padded_image = 4 * (H + 2) * (W + 2)
    nb = max(1, min(N, (2 << 20) // max(bytes_per_padded_image, 1)))
    while N % nb != 0:
        nb -= 1
    grid = (N // nb,)

    return pl.pallas_call(
        _relu_conv3x3_kernel,
        out_shape=jax.ShapeDtypeStruct((N, 1, H, W), jnp.float32),
        grid=grid,
        in_specs=[
            pl.BlockSpec(memory_space=pltpu.MemorySpace.SMEM),           # weights (3,3)
            pl.BlockSpec((nb, 1, H, W), lambda n: (n, 0, 0, 0)),         # input block
        ],
        out_specs=pl.BlockSpec((nb, 1, H, W), lambda n: (n, 0, 0, 0)),   # output block
        scratch_shapes=[pltpu.VMEM((nb, 1, H + 2, W + 2), jnp.float32)],  # padded ReLU'd x
        compiler_params=pltpu.CompilerParams(
            dimension_semantics=("parallel",),
            vmem_limit_bytes=32 * 1024 * 1024,
        ),
    )(w2d, x)


if __name__ == "__main__":
    key = jax.random.PRNGKey(0)
    kx, kw = jax.random.split(key)

    # Input matching the module's example: (2, 1, 4, 4)
    x = jax.random.normal(kx, (2, 1, 4, 4), dtype=jnp.float32)
    # Deterministic Conv2d(1,1,3,3,bias=False) weights (PyTorch-style uniform init scale)
    fan_in = 1 * KH * KW
    bound = 1.0 / (fan_in ** 0.5)
    weight = jax.random.uniform(kw, (1, 1, KH, KW), dtype=jnp.float32,
                                minval=-bound, maxval=bound)

    out = relu_conv3x3(x, weight)
    out = jax.block_until_ready(out)

    # Cross-check against plain-JAX reference (relu -> conv, padding=1)
    ref = jax.lax.conv_general_dilated(
        jnp.maximum(x, 0.0), weight,
        window_strides=(1, 1), padding=((1, 1), (1, 1)),
        dimension_numbers=("NCHW", "OIHW", "NCHW"))
    assert out.shape == (2, 1, 4, 4)
    assert jnp.allclose(out, ref, atol=1e-5, rtol=1e-5)

    print("KERNEL_OK")
</pallas_src>

<mosaic_0001>
module attributes {stable_mosaic.version = 11 : i64} {
  func.func @_relu_conv3x3_kernel(%arg0: i32, %arg1: memref<3x3xf32, #tpu.memory_space<smem>>, %arg2: memref<2x1x4x4xf32, #tpu.memory_space<vmem>>, %arg3: memref<2x1x4x4xf32, #tpu.memory_space<vmem>>, %arg4: memref<2x1x6x6xf32, #tpu.memory_space<vmem>>) attributes {dimension_semantics = [#tpu.dimension_semantics<parallel>], iteration_bounds = array<i64: 1>, scalar_prefetch = 0 : i64, scratch_operands = 1 : i64, tpu.core_type = #tpu.core_type<tc>, window_params = [{transform_indices = @transform_0, window_bounds = array<i64: 3, 3>}, {transform_indices = @transform_1, window_bounds = array<i64: 2, 1, 4, 4>}, {transform_indices = @transform_2, window_bounds = array<i64: 2, 1, 4, 4>}]} {
    %cst = arith.constant 0.000000e+00 : f32
    %0 = vector.broadcast %cst : f32 to vector<2x1x6x6xf32>
    %c0 = arith.constant 0 : index
    %c0_0 = arith.constant 0 : index
    %c0_1 = arith.constant 0 : index
    %c0_2 = arith.constant 0 : index
    %1 = vector.load %arg4[%c0, %c0_0, %c0_1, %c0_2] : memref<2x1x6x6xf32, #tpu.memory_space<vmem>>, vector<2x1x6x6xf32>
    tpu.vector_store %arg4[%c0, %c0_0, %c0_1, %c0_2], %0 {strides = array<i32>} : memref<2x1x6x6xf32, #tpu.memory_space<vmem>>, vector<2x1x6x6xf32>,
    %c0_3 = arith.constant 0 : index
    %c0_4 = arith.constant 0 : index
    %c0_5 = arith.constant 0 : index
    %c0_6 = arith.constant 0 : index
    %2 = vector.load %arg2[%c0_3, %c0_4, %c0_5, %c0_6] : memref<2x1x4x4xf32, #tpu.memory_space<vmem>>, vector<2x1x4x4xf32>
    %cst_7 = arith.constant 0.000000e+00 : f32
    %3 = vector.broadcast %cst_7 : f32 to vector<2x1x4x4xf32>
    %4 = arith.maximumf %2, %3 : vector<2x1x4x4xf32>
    %c0_8 = arith.constant 0 : index
    %c0_9 = arith.constant 0 : index
    %c1 = arith.constant 1 : index
    %c1_10 = arith.constant 1 : index
    %5 = vector.load %arg4[%c0_8, %c0_9, %c1, %c1_10] : memref<2x1x6x6xf32, #tpu.memory_space<vmem>>, vector<2x1x4x4xf32>
    tpu.vector_store %arg4[%c0_8, %c0_9, %c1, %c1_10], %4 {strides = array<i32>} : memref<2x1x6x6xf32, #tpu.memory_space<vmem>>, vector<2x1x4x4xf32>,
    %cst_11 = arith.constant 0.000000e+00 : f32
    %6 = vector.broadcast %cst_11 : f32 to vector<2x1x4x4xf32>
    %c0_12 = arith.constant 0 : index
    %c0_13 = arith.constant 0 : index
    %c0_14 = arith.constant 0 : index
    %c0_15 = arith.constant 0 : index
    %7 = vector.load %arg4[%c0_12, %c0_13, %c0_14, %c0_15] : memref<2x1x6x6xf32, #tpu.memory_space<vmem>>, vector<2x1x6x4xf32>
    %c0_16 = arith.constant 0 : index
    %c0_17 = arith.constant 0 : index
    %8 = memref.load %arg1[%c0_16, %c0_17] : memref<3x3xf32, #tpu.memory_space<smem>>
    %9 = vector.extract_strided_slice %7 {offsets = [0, 0, 0, 0], sizes = [2, 1, 4, 4], strides = [1, 1, 1, 1]} : vector<2x1x6x4xf32> to vector<2x1x4x4xf32>
    %10 = vector.broadcast %8 : f32 to vector<2x1x4x4xf32>
    %11 = arith.mulf %10, %9 : vector<2x1x4x4xf32>
    %12 = arith.addf %6, %11 : vector<2x1x4x4xf32>
    %c1_18 = arith.constant 1 : index
    %c0_19 = arith.constant 0 : index
    %13 = memref.load %arg1[%c1_18, %c0_19] : memref<3x3xf32, #tpu.memory_space<smem>>
    %14 = vector.extract_strided_slice %7 {offsets = [0, 0, 1, 0], sizes = [2, 1, 4, 4], strides = [1, 1, 1, 1]} : vector<2x1x6x4xf32> to vector<2x1x4x4xf32>
    %15 = vector.broadcast %13 : f32 to vector<2x1x4x4xf32>
    %16 = arith.mulf %15, %14 : vector<2x1x4x4xf32>
    %17 = arith.addf %12, %16 : vector<2x1x4x4xf32>
    %c2 = arith.constant 2 : index
    %c0_20 = arith.constant 0 : index
    %18 = memref.load %arg1[%c2, %c0_20] : memref<3x3xf32, #tpu.memory_space<smem>>
    %19 = vector.extract_strided_slice %7 {offsets = [0, 0, 2, 0], sizes = [2, 1, 4, 4], strides = [1, 1, 1, 1]} : vector<2x1x6x4xf32> to vector<2x1x4x4xf32>
    %20 = vector.broadcast %18 : f32 to vector<2x1x4x4xf32>
    %21 = arith.mulf %20, %19 : vector<2x1x4x4xf32>
    %22 = arith.addf %17, %21 : vector<2x1x4x4xf32>
    %c0_21 = arith.constant 0 : index
    %c0_22 = arith.constant 0 : index
    %c0_23 = arith.constant 0 : index
    %c1_24 = arith.constant 1 : index
    %23 = vector.load %arg4[%c0_21, %c0_22, %c0_23, %c1_24] : memref<2x1x6x6xf32, #tpu.memory_space<vmem>>, vector<2x1x6x4xf32>
    %c0_25 = arith.constant 0 : index
    %c1_26 = arith.constant 1 : index
    %24 = memref.load %arg1[%c0_25, %c1_26] : memref<3x3xf32, #tpu.memory_space<smem>>
    %25 = vector.extract_strided_slice %23 {offsets = [0, 0, 0, 0], sizes = [2, 1, 4, 4], strides = [1, 1, 1, 1]} : vector<2x1x6x4xf32> to vector<2x1x4x4xf32>
    %26 = vector.broadcast %24 : f32 to vector<2x1x4x4xf32>
    %27 = arith.mulf %26, %25 : vector<2x1x4x4xf32>
    %28 = arith.addf %22, %27 : vector<2x1x4x4xf32>
    %c1_27 = arith.constant 1 : index
    %c1_28 = arith.constant 1 : index
    %29 = memref.load %arg1[%c1_27, %c1_28] : memref<3x3xf32, #tpu.memory_space<smem>>
    %30 = vector.extract_strided_slice %23 {offsets = [0, 0, 1, 0], sizes = [2, 1, 4, 4], strides = [1, 1, 1, 1]} : vector<2x1x6x4xf32> to vector<2x1x4x4xf32>
    %31 = vector.broadcast %29 : f32 to vector<2x1x4x4xf32>
    %32 = arith.mulf %31, %30 : vector<2x1x4x4xf32>
    %33 = arith.addf %28, %32 : vector<2x1x4x4xf32>
    %c2_29 = arith.constant 2 : index
    %c1_30 = arith.constant 1 : index
    %34 = memref.load %arg1[%c2_29, %c1_30] : memref<3x3xf32, #tpu.memory_space<smem>>
    %35 = vector.extract_strided_slice %23 {offsets = [0, 0, 2, 0], sizes = [2, 1, 4, 4], strides = [1, 1, 1, 1]} : vector<2x1x6x4xf32> to vector<2x1x4x4xf32>
    %36 = vector.broadcast %34 : f32 to vector<2x1x4x4xf32>
    %37 = arith.mulf %36, %35 : vector<2x1x4x4xf32>
    %38 = arith.addf %33, %37 : vector<2x1x4x4xf32>
    %c0_31 = arith.constant 0 : index
    %c0_32 = arith.constant 0 : index
    %c0_33 = arith.constant 0 : index
    %c2_34 = arith.constant 2 : index
    %39 = vector.load %arg4[%c0_31, %c0_32, %c0_33, %c2_34] : memref<2x1x6x6xf32, #tpu.memory_space<vmem>>, vector<2x1x6x4xf32>
    %c0_35 = arith.constant 0 : index
    %c2_36 = arith.constant 2 : index
    %40 = memref.load %arg1[%c0_35, %c2_36] : memref<3x3xf32, #tpu.memory_space<smem>>
    %41 = vector.extract_strided_slice %39 {offsets = [0, 0, 0, 0], sizes = [2, 1, 4, 4], strides = [1, 1, 1, 1]} : vector<2x1x6x4xf32> to vector<2x1x4x4xf32>
    %42 = vector.broadcast %40 : f32 to vector<2x1x4x4xf32>
    %43 = arith.mulf %42, %41 : vector<2x1x4x4xf32>
    %44 = arith.addf %38, %43 : vector<2x1x4x4xf32>
    %c1_37 = arith.constant 1 : index
    %c2_38 = arith.constant 2 : index
    %45 = memref.load %arg1[%c1_37, %c2_38] : memref<3x3xf32, #tpu.memory_space<smem>>
    %46 = vector.extract_strided_slice %39 {offsets = [0, 0, 1, 0], sizes = [2, 1, 4, 4], strides = [1, 1, 1, 1]} : vector<2x1x6x4xf32> to vector<2x1x4x4xf32>
    %47 = vector.broadcast %45 : f32 to vector<2x1x4x4xf32>
    %48 = arith.mulf %47, %46 : vector<2x1x4x4xf32>
    %49 = arith.addf %44, %48 : vector<2x1x4x4xf32>
    %c2_39 = arith.constant 2 : index
    %c2_40 = arith.constant 2 : index
    %50 = memref.load %arg1[%c2_39, %c2_40] : memref<3x3xf32, #tpu.memory_space<smem>>
    %51 = vector.extract_strided_slice %39 {offsets = [0, 0, 2, 0], sizes = [2, 1, 4, 4], strides = [1, 1, 1, 1]} : vector<2x1x6x4xf32> to vector<2x1x4x4xf32>
    %52 = vector.broadcast %50 : f32 to vector<2x1x4x4xf32>
    %53 = arith.mulf %52, %51 : vector<2x1x4x4xf32>
    %54 = arith.addf %49, %53 : vector<2x1x4x4xf32>
    %c0_41 = arith.constant 0 : index
    %c0_42 = arith.constant 0 : index
    %c0_43 = arith.constant 0 : index
    %c0_44 = arith.constant 0 : index
    %55 = vector.load %arg3[%c0_41, %c0_42, %c0_43, %c0_44] : memref<2x1x4x4xf32, #tpu.memory_space<vmem>>, vector<2x1x4x4xf32>
    tpu.vector_store %arg3[%c0_41, %c0_42, %c0_43, %c0_44], %54 {strides = array<i32>} : memref<2x1x4x4xf32, #tpu.memory_space<vmem>>, vector<2x1x4x4xf32>,
    return
  }
  func.func @transform_0(%arg0: i32) -> (i32, i32) {
    %c0_i32 = arith.constant 0 : i32
    %c0_i32_0 = arith.constant 0 : i32
    %c0_i32_1 = arith.constant 0 : i32
    return %c0_i32, %c0_i32_0 : i32, i32
  }
  func.func @transform_1(%arg0: i32) -> (i32, i32, i32, i32) {
    %c0_i32 = arith.constant 0 : i32
    %c0_i32_0 = arith.constant 0 : i32
    %c0_i32_1 = arith.constant 0 : i32
    %c0_i32_2 = arith.constant 0 : i32
    return %arg0, %c0_i32, %c0_i32_0, %c0_i32_1 : i32, i32, i32, i32
  }
  func.func @transform_2(%arg0: i32) -> (i32, i32, i32, i32) {
    %c0_i32 = arith.constant 0 : i32
    %c0_i32_0 = arith.constant 0 : i32
    %c0_i32_1 = arith.constant 0 : i32
    %c0_i32_2 = arith.constant 0 : i32
    return %arg0, %c0_i32, %c0_i32_0, %c0_i32_1 : i32, i32, i32, i32
  }
}

</mosaic_0001>

<bundles_post_ra>
// kernel: tpu_custom_call.1
= control target key start
LH: loop header
LB: loop body
LE: loop exit
PB: predicated region body
PF: predicated region fallthrough
CT: control target
= control target key end

     0   :  { %7 = vsyncpa [#allocation6], 0  ;;  %s361_s0 = inlined_call_operand.hbm [shape: f32[3,3], index: 0, kind: input, shape index: {}]   ;;  %s362_s1 = inlined_call_operand.hbm [shape: f32[2,1,4,4], index: 1, kind: input, shape index: {}]   ;;  %s363_s2 = inlined_call_operand.hbm [shape: f32[2,1,4,4], index: 2, kind: output, shape index: {}]  }
   0x1   :  { %8 = vsyncpa [#allocation4], 0 }
   0x2   :  { %9 = vsyncpa [#allocation5], 0  ;;  %s217_s11 = scalar_lea.hbm %s361_s0, 64 }
   0x3   :  { %p218_p0 = scmp.ne.s32.totalorder %s361_s0, %s217_s11  ;;  %p221_p1 = scmp.lt.u32.totalorder %s217_s11, %s361_s0 }
   0x5   :  { %p223_p2 = pnand %p221_p1, %p218_p0 }
   0x7   :  { %226 = shalt.err (!%p223_p2)
}
   0x8   :  { %s277_s16 = smov [#allocation3]   ;;  %s278_s19 = smov [#allocation7]  }
   0x9   :  { %17 = dma.hbm_to_smem %s361_s0, 64, %s277_s16, [#allocation6]  }
   0xa   :  { %s23_s20 = sshll.u32 %s278_s19, 4  ;;  %s227_s23 = scalar_lea.hbm %s362_s1, 128  ;;  %s24_s20 = int_to_ptr.vmem [resolvable:$true] %s23_s20 }
   0xb   :  { %p228_p3 = scmp.ne.s32.totalorder %s362_s1, %s227_s23  ;;  %p231_p4 = scmp.lt.u32.totalorder %s227_s23, %s362_s1 }
   0xd   :  { %p233_p5 = pnand %p231_p4, %p228_p3 }
   0xf   :  { %236 = shalt.err (!%p233_p5)
}
  0x10   :  { %s237_s28 = scalar_lea.vmem %s24_s20, 128  ;;  %p242_p7 = scmp.lt.s32.totalorder %s24_s20, %s24_s20 }
  0x11   :  { %p238_p6 = scmp.ne.s32.totalorder %s24_s20, %s237_s28  ;;  %p243_p8 = scmp.lt.s32.totalorder %s237_s28, %s237_s28 }
  0x13   :  { %p244_p9 = por %p243_p8, %p242_p7 }
  0x15   :  { %p245_p10 = pnand %p244_p9, %p238_p6 }
  0x17   :  { %248 = shalt.err (!%p245_p10)
}
  0x18   :  { %s279_s0 = smov 64   ;;  %s280_s29 = smov 4  }
  0x19   :  { %29 = dma.hbm_to_vmem [thread:$0]  %s362_s1, 128, %s24_s20, [#allocation4], %s279_s0, %s279_s0, %s280_s29  }
  0x1a   :  { %271 = dma.done.wait [#allocation6], 64  }
  0x1b   :  { %272 = vsyncadd [#allocation6], 4294967232 }
  0x1c   :  { %273 = dma.done.wait [#allocation4], 128  }
  0x1d   :  { %274 = vsyncadd [#allocation4], 4294967168 }
  0x1e   :  { %36 = sfence }
  0x1f   :  { %v40_v0 = vld [vmem:[#allocation7] sm:$0xf]  ;;  %v41_v1 = vld [vmem:[#allocation7 + $0x4] sm:$0xf]  ;;  %vm37_vm0 = vcmask 46080   ;;  %v281_v3 = vmov 0.0  }
  0x20   :  { %v42_v2 = vmax.f32 %v40_v0, 0.0  ;;  %38 = vst.msk [vmem:[#allocation2] sm:$0x3f] %vm37_vm0, %v281_v3  ;;  %39 = vst.msk [vmem:[#allocation2 + $0x8] sm:$0x3f] %vm37_vm0, %v281_v3  ;;  %s282_s4 = smov 1  }
  0x21   :  { %v43_v4 = vmax.f32 %v41_v1, 0.0  ;;  %s328_s5 = sld [smem:[#allocation3 + $0x2]]  ;;  %vm52_vm1 = vcmask 35848   ;;  %s202_s1 = sld [smem:[#allocation3 + $0x1]]  ;;  %vm179_vm2 = vcmask 27648  }
  0x22   :  { %46 = vrot.lane.b32.xlu0 %v42_v2, %s282_s4  ;;  %s203_s6 = sld [smem:[#allocation3 + $0x81]]  ;;  %s333_s8 = sld [smem:[#allocation3 + $0x82]] }
  0x23   :  { %s330_s7 = sld [smem:[#allocation3 + $0x101]]  ;;  %s336_s9 = sld [smem:[#allocation3 + $0x102]] }
  0x24   :  { %s283_s10 = smov 126   ;;  %s284_s11 = smov 127  }
  0x25   :  { %s200_s12 = sld [smem:[#allocation3 + $0x80]]  ;;  %s285_s15 = smov [#allocation8]  }
  0x26   :  { %48 = vrot.lane.b32.xlu0 %v43_v4, %s282_s4  ;;  %s57_s13 = sld [smem:[#allocation3]]  ;;  %s187_s16 = sshll.u32 %s285_s15, 4  ;;  %s188_s16 = int_to_ptr.vmem [resolvable:$true] %s187_s16 }
  0x27   :  { %v134_v7 = vstv %s328_s5  ;;  %v88_v8 = vstv %s202_s1  ;;  %s201_s14 = sld [smem:[#allocation3 + $0x100]]  ;;  %s249_s17 = scalar_lea.vmem %s188_s16, 128 }
  0x28   :  { %v102_v9 = vstv %s203_s6  ;;  %v148_v19 = vstv %s333_s8  ;;  %p250_p11 = scmp.ne.s32.totalorder %s188_s16, %s249_s17  ;;  %p254_p12 = scmp.lt.s32.totalorder %s188_s16, %s188_s16 }
  0x29   :  { %v118_v14 = vstv %s330_s7  ;;  %v164_v24 = vstv %s336_s9  ;;  %p255_p13 = scmp.lt.s32.totalorder %s249_s17, %s249_s17 }
  0x2b   :  { %v64_v35 = vstv %s200_s12  ;;  %p256_p0 = por %p255_p13, %p254_p12 }
  0x2c   :  { %v58_v37 = vstv %s57_s13 }
  0x2d   :  { %v76_v38 = vstv %s201_s14  ;;  %p257_p1 = pnand %p256_p0, %p250_p11 }
  0x94   :  { %v47_v5 = vpop.permute.xlu0 %46 }
  0x95   :  { %53 = vst.msk [vmem:[#allocation2 + $0x1] sm:$0xf] %vm52_vm1, %v47_v5 }
  0x98   :  { %v49_v6 = vpop.permute.xlu0 %48 }
  0x99   :  { %54 = vst.msk [vmem:[#allocation2 + $0x9] sm:$0xf] %vm52_vm1, %v49_v6 }
  0x9c   :  { %v55_v10 = vld [vmem:[#allocation2] sm:$0x3f] }
  0x9d   :  { %v135_v11 = vmul.f32 %v134_v7, %v55_v10  ;;  %v89_v12 = vmul.f32 %v88_v8, %v55_v10  ;;  %v103_v13 = vmul.f32 %v102_v9, %v55_v10  ;;  %v119_v18 = vmul.f32 %v118_v14, %v55_v10 }
  0x9e   :  { %v149_v22 = vmul.f32 %v148_v19, %v55_v10  ;;  %v165_v27 = vmul.f32 %v164_v24, %v55_v10  ;;  %v65_v36 = vmul.f32 %v64_v35, %v55_v10  ;;  %v59_v40 = vmul.f32 %v58_v37, %v55_v10 }
  0x9f   :  { %139 = vrot.lane.b32.xlu0 %v135_v11, %s283_s10  ;;  %93 = vrot.lane.b32.xlu1 %v89_v12, %s284_s11  ;;  %v107_v17 = vrot.slane %v103_v13, 1  ;;  %v123_v20 = vrot.slane %v119_v18, 2  ;;  %v77_v41 = vmul.f32 %v76_v38, %v55_v10 }
  0xa0   :  { %v56_v15 = vld [vmem:[#allocation2 + $0x8] sm:$0x3f]  ;;  %v153_v25 = vrot.slane %v149_v22, 1  ;;  %v169_v29 = vrot.slane %v165_v27, 2  ;;  %v69_v39 = vrot.slane %v65_v36, 1 }
  0xa1   :  { %v90_v16 = vmul.f32 %v88_v8, %v56_v15  ;;  %v136_v21 = vmul.f32 %v134_v7, %v56_v15  ;;  %v104_v23 = vmul.f32 %v102_v9, %v56_v15  ;;  %v120_v28 = vmul.f32 %v118_v14, %v56_v15 }
  0xa2   :  { %v150_v31 = vmul.f32 %v148_v19, %v56_v15  ;;  %v166_v33 = vmul.f32 %v164_v24, %v56_v15  ;;  %v73_v42 = vadd.f32 %v69_v39, %v59_v40  ;;  %v66_v43 = vmul.f32 %v64_v35, %v56_v15 }
  0xa3   :  { %109 = vrot.lane.b32.xlu0 %v107_v17, %s284_s11  ;;  %95 = vrot.lane.b32.xlu1 %v90_v16, %s284_s11  ;;  %v108_v26 = vrot.slane %v104_v23, 1  ;;  %v124_v30 = vrot.slane %v120_v28, 2  ;;  %v81_v46 = vrot.slane %v77_v41, 2  ;;  %v60_v52 = vmul.f32 %v58_v37, %v56_v15 }
  0xa4   :  { %v154_v32 = vrot.slane %v150_v31, 1  ;;  %v170_v34 = vrot.slane %v166_v33, 2  ;;  %v70_v48 = vrot.slane %v66_v43, 1  ;;  %v78_v53 = vmul.f32 %v76_v38, %v56_v15 }
  0xa5   :  { %v85_v47 = vadd.f32 %v81_v46, %v73_v42 }
  0xa6   :  { %v74_v55 = vadd.f32 %v70_v48, %v60_v52  ;;  %v82_v58 = vrot.slane %v78_v53, 2 }
  0xa7   :  { %125 = vrot.lane.b32.xlu0 %v123_v20, %s284_s11  ;;  %141 = vrot.lane.b32.xlu1 %v136_v21, %s283_s10 }
  0xa8   :  { %v86_v60 = vadd.f32 %v82_v58, %v74_v55 }
  0xab   :  { %155 = vrot.lane.b32.xlu0 %v153_v25, %s283_s10  ;;  %111 = vrot.lane.b32.xlu1 %v108_v26, %s284_s11 }
  0xaf   :  { %171 = vrot.lane.b32.xlu0 %v169_v29, %s283_s10  ;;  %127 = vrot.lane.b32.xlu1 %v124_v30, %s284_s11 }
  0xb3   :  { %157 = vrot.lane.b32.xlu1 %v154_v32, %s283_s10 }
  0xb7   :  { %173 = vrot.lane.b32.xlu1 %v170_v34, %s283_s10 }
 0x111   :  { %v140_v44 = vpop.permute.xlu0 %139  ;;  %v94_v45 = vpop.permute.xlu1 %93 }
 0x112   :  { %v99_v51 = vadd.f32 %v94_v45, %v85_v47 }
 0x115   :  { %v110_v49 = vpop.permute.xlu0 %109  ;;  %v96_v50 = vpop.permute.xlu1 %95 }
 0x116   :  { %v115_v54 = vadd.f32 %v110_v49, %v99_v51  ;;  %v100_v0 = vadd.f32 %v96_v50, %v86_v60 }
 0x119   :  { %v126_v56 = vpop.permute.xlu0 %125  ;;  %v142_v57 = vpop.permute.xlu1 %141 }
 0x11a   :  { %v131_v59 = vadd.f32 %v126_v56, %v115_v54 }
 0x11c   :  { %v145_v61 = vadd.f32 %v140_v44, %v131_v59 }
 0x11d   :  { %v156_v62 = vpop.permute.xlu0 %155  ;;  %v112_v63 = vpop.permute.xlu1 %111 }
 0x11e   :  { %v161_v1 = vadd.f32 %v156_v62, %v145_v61  ;;  %v116_v2 = vadd.f32 %v112_v63, %v100_v0 }
 0x121   :  { %v172_v3 = vpop.permute.xlu0 %171  ;;  %v128_v4 = vpop.permute.xlu1 %127 }
 0x122   :  { %v177_v5 = vadd.f32 %v172_v3, %v161_v1  ;;  %v132_v6 = vadd.f32 %v128_v4, %v116_v2 }
 0x124   :  { %v146_v7 = vadd.f32 %v142_v57, %v132_v6  ;;  %180 = vst.msk [vmem:[#allocation8] sm:$0xf] %vm179_vm2, %v177_v5 }
 0x125   :  { %v158_v8 = vpop.permute.xlu1 %157 }
 0x126   :  { %v162_v9 = vadd.f32 %v158_v8, %v146_v7 }
 0x129   :  { %v174_v10 = vpop.permute.xlu1 %173 }
 0x12a   :  { %v178_v11 = vadd.f32 %v174_v10, %v162_v9 }
 0x12c   :  { %181 = vst.msk [vmem:[#allocation8 + $0x4] sm:$0xf] %vm179_vm2, %v178_v11 }
 0x12d   :  { %260 = shalt.err (!%p257_p1)
}
 0x12e   :  { %s261_s20 = scalar_lea.hbm %s363_s2, 128 }
 0x12f   :  { %p262_p2 = scmp.ne.s32.totalorder %s363_s2, %s261_s20  ;;  %p265_p3 = scmp.lt.u32.totalorder %s261_s20, %s363_s2 }
 0x131   :  { %p267_p4 = pnand %p265_p3, %p262_p2 }
 0x133   :  { %270 = shalt.err (!%p267_p4)
}
 0x134   :  { %193 = dma.vmem_to_hbm [thread:$0]  %s188_s16, 128, %s363_s2, [#allocation5], %s279_s0, %s279_s0, %s280_s29  }
 0x135   :  { %275 = dma.done.wait [#allocation5], 128  }
 0x136   :  { %276 = vsyncadd [#allocation5], 4294967168 }
 0x137   :  { %197 = vsyncpa [#allocation4], 1 }
 0x138   :  { %198 = vsyncpa [#allocation5], 1 }
 0x139   :  { %199 = vsyncpa [#allocation6], 1 }

</bundles_post_ra>
